<compile_context>
chip_gen: v7x
topology: tpu7x:2x2x1
jax: 0.10.0
libtpu: 0.0.40
codegen_flags: <defaults>
</compile_context>

<pallas_src>
import jax
import jax.numpy as jnp
from jax.experimental import pallas as pl
from jax.experimental.pallas import tpu as pltpu


def _lstm_encoder_kernel(ids_ref,      # SMEM scalar-prefetch: (S,) int32 token ids
                         wfused_ref,   # (V, 4H)  embedding @ W_ih, VMEM resident
                         whh_ref,      # (H, 4H)
                         b_ref,        # (1, 4H)  b_ih + b_hh
                         h0_ref,       # (1, H)
                         c0_ref,       # (1, H)
                         out_ref,      # (S, H)
                         hn_ref,       # (1, H)
                         cn_ref):      # (1, H)
    S, H = out_ref.shape

    whh = whh_ref[...]                 # hoisted: loaded once, reused every step
    bias = b_ref[...]
    h = h0_ref[...]                    # (1, H)
    c = c0_ref[...]                    # (1, H)

    # Serial recurrence, statically unrolled (S is small). The fused-table gather
    # and bias add depend only on ids[t], so the LLO scheduler hoists them off the
    # h -> c -> h critical path; only jnp.dot(h, whh) + gate math stay serial.
    for t in range(S):
        gx = wfused_ref[pl.ds(ids_ref[t], 1), :] + bias               # (1, 4H)
        gates = gx + jnp.dot(h, whh, preferred_element_type=jnp.float32)

        # Whole-vreg nonlinearities (2 EUP pushes), then lane-slice i/f/g/o.
        sig = jax.nn.sigmoid(gates)
        tnh = jnp.tanh(gates)
        i_g = sig[:, 0 * H:1 * H]
        f_g = sig[:, 1 * H:2 * H]
        g_g = tnh[:, 2 * H:3 * H]
        o_g = sig[:, 3 * H:4 * H]

        c = f_g * c + i_g * g_g
        h = o_g * jnp.tanh(c)

        # Per-step store: uses the otherwise-idle vst slot, caps vreg pressure.
        out_ref[pl.ds(t, 1), :] = h

    hn_ref[...] = h
    cn_ref[...] = c


def encoder_forward(word_inputs, hidden, params):
    """Pallas equivalent of Encoder.forward(word_inputs, hidden)."""
    emb_table = params["embedding"]          # (V, E)
    w_ih = params["w_ih"]                    # (E, 4H)
    w_hh = params["w_hh"]                    # (H, 4H)
    bias = params["bias"]                    # (1, 4H)

    h0, c0 = hidden                          # each (1, 1, H)  (n_layers=1, batch=1)
    H = h0.shape[-1]
    V, E = emb_table.shape
    S = word_inputs.shape[0]

    # Fuse nn.Embedding with the LSTM input projection: one (V,E)x(E,4H) matmul,
    # so the kernel gathers precomputed input gates as lane-dense (1, 4H) rows.
    w_fused = jnp.dot(emb_table, w_ih, preferred_element_type=jnp.float32)  # (V, 4H)

    # Clamp ids: dynamic VMEM row loads have no bounds check on TPU.
    ids = jnp.clip(word_inputs.astype(jnp.int32), 0, V - 1)

    grid_spec = pltpu.PrefetchScalarGridSpec(
        num_scalar_prefetch=1,               # ids land in SMEM
        grid=(1,),                           # single invocation: loop runs in-kernel
        in_specs=[
            # Fused (V,4H) table resident in VMEM (32 KiB at test size). For large
            # vocabularies use memory_space=pl.ANY + per-row make_async_copy gather.
            pl.BlockSpec((V, 4 * H), lambda i, ids: (0, 0)),
            pl.BlockSpec((H, 4 * H), lambda i, ids: (0, 0)),
            pl.BlockSpec((1, 4 * H), lambda i, ids: (0, 0)),
            pl.BlockSpec((1, H), lambda i, ids: (0, 0)),
            pl.BlockSpec((1, H), lambda i, ids: (0, 0)),
        ],
        out_specs=[
            pl.BlockSpec((S, H), lambda i, ids: (0, 0)),        # per-step stores
            pl.BlockSpec((1, H), lambda i, ids: (0, 0)),        # h_n
            pl.BlockSpec((1, H), lambda i, ids: (0, 0)),        # c_n
        ],
    )

    cost = pl.CostEstimate(
        flops=int(S * (2 * H * 4 * H + 12 * 4 * H)),            # h@W_hh + gate math
        transcendentals=int(S * (2 * 4 * H + H)),               # sigmoid/tanh + tanh(c)
        bytes_accessed=int(4 * (V * 4 * H + H * 4 * H + 4 * H
                                + 2 * H + S * H + 2 * H) + 4 * S),
    )

    out, h_n, c_n = pl.pallas_call(
        _lstm_encoder_kernel,
        out_shape=(
            jax.ShapeDtypeStruct((S, H), jnp.float32),
            jax.ShapeDtypeStruct((1, H), jnp.float32),
            jax.ShapeDtypeStruct((1, H), jnp.float32),
        ),
        grid_spec=grid_spec,
        cost_estimate=cost,
        compiler_params=pltpu.CompilerParams(
            dimension_semantics=("arbitrary",)),                # recurrence is serial
    )(ids, w_fused, w_hh, bias, h0.reshape(1, H), c0.reshape(1, H))

    # match PyTorch shapes: output (S, 1, H), hidden each (n_layers=1, 1, H)
    output = out.reshape(S, 1, H)
    return output, (h_n.reshape(1, 1, H), c_n.reshape(1, 1, H))


def reference_forward(word_inputs, hidden, params):
    """Pure-JAX reference implementing the same embedding+LSTM math."""
    emb = jnp.take(params["embedding"], word_inputs.astype(jnp.int32), axis=0)  # (S, E)
    w_ih, w_hh, bias = params["w_ih"], params["w_hh"], params["bias"]
    H = w_hh.shape[0]
    h0, c0 = hidden[0].reshape(1, H), hidden[1].reshape(1, H)

    def step(carry, x):
        h, c = carry
        gates = x[None, :] @ w_ih + h @ w_hh + bias
        i_g = jax.nn.sigmoid(gates[:, 0 * H:1 * H])
        f_g = jax.nn.sigmoid(gates[:, 1 * H:2 * H])
        g_g = jnp.tanh(gates[:, 2 * H:3 * H])
        o_g = jax.nn.sigmoid(gates[:, 3 * H:4 * H])
        c_new = f_g * c + i_g * g_g
        h_new = o_g * jnp.tanh(c_new)
        return (h_new, c_new), h_new[0]

    (h_n, c_n), outs = jax.lax.scan(step, (h0, c0), emb)
    S = word_inputs.shape[0]
    return outs.reshape(S, 1, H), (h_n.reshape(1, 1, H), c_n.reshape(1, 1, H))


def init_params(key, input_size, embedding_size, hidden_size):
    k_emb, k_ih, k_hh, k_b1, k_b2 = jax.random.split(key, 5)
    scale = 1.0 / jnp.sqrt(hidden_size)
    emb = jax.random.normal(k_emb, (input_size, embedding_size), jnp.float32)
    w_ih = jax.random.uniform(k_ih, (embedding_size, 4 * hidden_size),
                              jnp.float32, -scale, scale)
    w_hh = jax.random.uniform(k_hh, (hidden_size, 4 * hidden_size),
                              jnp.float32, -scale, scale)
    b_ih = jax.random.uniform(k_b1, (4 * hidden_size,), jnp.float32, -scale, scale)
    b_hh = jax.random.uniform(k_b2, (4 * hidden_size,), jnp.float32, -scale, scale)
    return {
        "embedding": emb,
        "w_ih": w_ih,
        "w_hh": w_hh,
        "bias": (b_ih + b_hh).reshape(1, 4 * hidden_size),
    }


if __name__ == "__main__":
    INPUT_SIZE = 64        # vocab
    EMBEDDING_SIZE = 32
    HIDDEN_SIZE = 32
    SEQ_LEN = 8

    key = jax.random.PRNGKey(0)
    k_params, k_tokens = jax.random.split(key)

    params = init_params(k_params, INPUT_SIZE, EMBEDDING_SIZE, HIDDEN_SIZE)
    word_inputs = jax.random.randint(k_tokens, (SEQ_LEN,), 0, INPUT_SIZE, jnp.int32)

    # Encoder.init_hidden(): zeros (n_layers=1, 1, hidden)
    hidden = (jnp.zeros((1, 1, HIDDEN_SIZE), jnp.float32),
              jnp.zeros((1, 1, HIDDEN_SIZE), jnp.float32))

    output, (h_n, c_n) = encoder_forward(word_inputs, hidden, params)
    jax.block_until_ready(output)
    jax.block_until_ready(h_n)
    jax.block_until_ready(c_n)

    ref_out, (ref_h, ref_c) = reference_forward(word_inputs, hidden, params)
    assert output.shape == (SEQ_LEN, 1, HIDDEN_SIZE)
    assert h_n.shape == (1, 1, HIDDEN_SIZE) and c_n.shape == (1, 1, HIDDEN_SIZE)
    assert jnp.allclose(output, ref_out, atol=1e-5, rtol=1e-5)
    assert jnp.allclose(h_n, ref_h, atol=1e-5, rtol=1e-5)
    assert jnp.allclose(c_n, ref_c, atol=1e-5, rtol=1e-5)

    print("KERNEL_OK")
</pallas_src>

<mosaic_0001>
module attributes {stable_mosaic.version = 11 : i64} {
  func.func @_lstm_encoder_kernel(%arg0: i32, %arg1: memref<8xi32, #tpu.memory_space<smem>>, %arg2: memref<64x128xf32, #tpu.memory_space<vmem>>, %arg3: memref<32x128xf32, #tpu.memory_space<vmem>>, %arg4: memref<1x128xf32, #tpu.memory_space<vmem>>, %arg5: memref<1x32xf32, #tpu.memory_space<vmem>>, %arg6: memref<1x32xf32, #tpu.memory_space<vmem>>, %arg7: memref<8x32xf32, #tpu.memory_space<vmem>>, %arg8: memref<1x32xf32, #tpu.memory_space<vmem>>, %arg9: memref<1x32xf32, #tpu.memory_space<vmem>>) attributes {dimension_semantics = [#tpu.dimension_semantics<arbitrary>], iteration_bounds = array<i64: 1>, scalar_prefetch = 1 : i64, scratch_operands = 0 : i64, tpu.core_type = #tpu.core_type<tc>, window_params = [{pipeline_mode = #tpu.pipeline_mode<synchronous>, transform_indices = @transform_0, window_bounds = array<i64: 64, 128>}, {pipeline_mode = #tpu.pipeline_mode<synchronous>, transform_indices = @transform_1, window_bounds = array<i64: 32, 128>}, {pipeline_mode = #tpu.pipeline_mode<synchronous>, transform_indices = @transform_2, window_bounds = array<i64: 1, 128>}, {pipeline_mode = #tpu.pipeline_mode<synchronous>, transform_indices = @transform_3, window_bounds = array<i64: 1, 32>}, {pipeline_mode = #tpu.pipeline_mode<synchronous>, transform_indices = @transform_4, window_bounds = array<i64: 1, 32>}, {pipeline_mode = #tpu.pipeline_mode<synchronous>, transform_indices = @transform_5, window_bounds = array<i64: 8, 32>}, {pipeline_mode = #tpu.pipeline_mode<synchronous>, transform_indices = @transform_6, window_bounds = array<i64: 1, 32>}, {pipeline_mode = #tpu.pipeline_mode<synchronous>, transform_indices = @transform_7, window_bounds = array<i64: 1, 32>}]} {
    %c0 = arith.constant 0 : index
    %c0_0 = arith.constant 0 : index
    %0 = vector.load %arg3[%c0, %c0_0] : memref<32x128xf32, #tpu.memory_space<vmem>>, vector<32x128xf32>
    %c0_1 = arith.constant 0 : index
    %c0_2 = arith.constant 0 : index
    %1 = vector.load %arg4[%c0_1, %c0_2] : memref<1x128xf32, #tpu.memory_space<vmem>>, vector<1x128xf32>
    %c0_3 = arith.constant 0 : index
    %c0_4 = arith.constant 0 : index
    %2 = vector.load %arg5[%c0_3, %c0_4] : memref<1x32xf32, #tpu.memory_space<vmem>>, vector<1x32xf32>
    %c0_5 = arith.constant 0 : index
    %c0_6 = arith.constant 0 : index
    %3 = vector.load %arg6[%c0_5, %c0_6] : memref<1x32xf32, #tpu.memory_space<vmem>>, vector<1x32xf32>
    %c0_7 = arith.constant 0 : index
    %4 = memref.load %arg1[%c0_7] : memref<8xi32, #tpu.memory_space<smem>>
    %5 = arith.index_cast %4 : i32 to index
    %c0_8 = arith.constant 0 : index
    %6 = vector.load %arg2[%5, %c0_8] : memref<64x128xf32, #tpu.memory_space<vmem>>, vector<1x128xf32>
    %7 = arith.addf %6, %1 : vector<1x128xf32>
    %cst = arith.constant dense<0.000000e+00> : vector<1x128xf32>
    %8 = tpu.matmul %2, %0, %cst {dimension_numbers = #tpu.dot_dimension_numbers<[1], [0], [0], [1], [0, 0, 1, 1], [], []>} : vector<1x32xf32>, vector<32x128xf32>, vector<1x128xf32> -> vector<1x128xf32>
    %9 = arith.addf %7, %8 : vector<1x128xf32>
    %10 = arith.negf %9 : vector<1x128xf32>
    %11 = math.exp %10 : vector<1x128xf32>
    %cst_9 = arith.constant 1.000000e+00 : f32
    %12 = vector.broadcast %cst_9 : f32 to vector<1x128xf32>
    %13 = arith.addf %12, %11 : vector<1x128xf32>
    %14 = arith.divf %12, %13 : vector<1x128xf32>
    %15 = math.tanh %9 : vector<1x128xf32>
    %16 = vector.extract_strided_slice %14 {offsets = [0, 0], sizes = [1, 32], strides = [1, 1]} : vector<1x128xf32> to vector<1x32xf32>
    %17 = vector.extract_strided_slice %14 {offsets = [0, 32], sizes = [1, 32], strides = [1, 1]} : vector<1x128xf32> to vector<1x32xf32>
    %18 = vector.extract_strided_slice %15 {offsets = [0, 64], sizes = [1, 32], strides = [1, 1]} : vector<1x128xf32> to vector<1x32xf32>
    %19 = vector.extract_strided_slice %14 {offsets = [0, 96], sizes = [1, 32], strides = [1, 1]} : vector<1x128xf32> to vector<1x32xf32>
    %20 = arith.mulf %17, %3 : vector<1x32xf32>
    %21 = arith.mulf %16, %18 : vector<1x32xf32>
    %22 = arith.addf %20, %21 : vector<1x32xf32>
    %23 = math.tanh %22 : vector<1x32xf32>
    %24 = arith.mulf %19, %23 : vector<1x32xf32>
    %c0_10 = arith.constant 0 : index
    %c0_11 = arith.constant 0 : index
    %25 = vector.load %arg7[%c0_10, %c0_11] : memref<8x32xf32, #tpu.memory_space<vmem>>, vector<1x32xf32>
    tpu.vector_store %arg7[%c0_10, %c0_11], %24 {strides = array<i32>} : memref<8x32xf32, #tpu.memory_space<vmem>>, vector<1x32xf32>,
    %c1 = arith.constant 1 : index
    %26 = memref.load %arg1[%c1] : memref<8xi32, #tpu.memory_space<smem>>
    %27 = arith.index_cast %26 : i32 to index
    %c0_12 = arith.constant 0 : index
    %28 = vector.load %arg2[%27, %c0_12] : memref<64x128xf32, #tpu.memory_space<vmem>>, vector<1x128xf32>
    %29 = arith.addf %28, %1 : vector<1x128xf32>
    %cst_13 = arith.constant dense<0.000000e+00> : vector<1x128xf32>
    %30 = tpu.matmul %24, %0, %cst_13 {dimension_numbers = #tpu.dot_dimension_numbers<[1], [0], [0], [1], [0, 0, 1, 1], [], []>} : vector<1x32xf32>, vector<32x128xf32>, vector<1x128xf32> -> vector<1x128xf32>
    %31 = arith.addf %29, %30 : vector<1x128xf32>
    %32 = arith.negf %31 : vector<1x128xf32>
    %33 = math.exp %32 : vector<1x128xf32>
    %cst_14 = arith.constant 1.000000e+00 : f32
    %34 = vector.broadcast %cst_14 : f32 to vector<1x128xf32>
    %35 = arith.addf %34, %33 : vector<1x128xf32>
    %36 = arith.divf %34, %35 : vector<1x128xf32>
    %37 = math.tanh %31 : vector<1x128xf32>
    %38 = vector.extract_strided_slice %36 {offsets = [0, 0], sizes = [1, 32], strides = [1, 1]} : vector<1x128xf32> to vector<1x32xf32>
    %39 = vector.extract_strided_slice %36 {offsets = [0, 32], sizes = [1, 32], strides = [1, 1]} : vector<1x128xf32> to vector<1x32xf32>
    %40 = vector.extract_strided_slice %37 {offsets = [0, 64], sizes = [1, 32], strides = [1, 1]} : vector<1x128xf32> to vector<1x32xf32>
    %41 = vector.extract_strided_slice %36 {offsets = [0, 96], sizes = [1, 32], strides = [1, 1]} : vector<1x128xf32> to vector<1x32xf32>
    %42 = arith.mulf %39, %22 : vector<1x32xf32>
    %43 = arith.mulf %38, %40 : vector<1x32xf32>
    %44 = arith.addf %42, %43 : vector<1x32xf32>
    %45 = math.tanh %44 : vector<1x32xf32>
    %46 = arith.mulf %41, %45 : vector<1x32xf32>
    %c1_15 = arith.constant 1 : index
    %c0_16 = arith.constant 0 : index
    %47 = vector.load %arg7[%c1_15, %c0_16] : memref<8x32xf32, #tpu.memory_space<vmem>>, vector<1x32xf32>
    tpu.vector_store %arg7[%c1_15, %c0_16], %46 {strides = array<i32>} : memref<8x32xf32, #tpu.memory_space<vmem>>, vector<1x32xf32>,
    %c2 = arith.constant 2 : index
    %48 = memref.load %arg1[%c2] : memref<8xi32, #tpu.memory_space<smem>>
    %49 = arith.index_cast %48 : i32 to index
    %c0_17 = arith.constant 0 : index
    %50 = vector.load %arg2[%49, %c0_17] : memref<64x128xf32, #tpu.memory_space<vmem>>, vector<1x128xf32>
    %51 = arith.addf %50, %1 : vector<1x128xf32>
    %cst_18 = arith.constant dense<0.000000e+00> : vector<1x128xf32>
    %52 = tpu.matmul %46, %0, %cst_18 {dimension_numbers = #tpu.dot_dimension_numbers<[1], [0], [0], [1], [0, 0, 1, 1], [], []>} : vector<1x32xf32>, vector<32x128xf32>, vector<1x128xf32> -> vector<1x128xf32>
    %53 = arith.addf %51, %52 : vector<1x128xf32>
    %54 = arith.negf %53 : vector<1x128xf32>
    %55 = math.exp %54 : vector<1x128xf32>
    %cst_19 = arith.constant 1.000000e+00 : f32
    %56 = vector.broadcast %cst_19 : f32 to vector<1x128xf32>
    %57 = arith.addf %56, %55 : vector<1x128xf32>
    %58 = arith.divf %56, %57 : vector<1x128xf32>
    %59 = math.tanh %53 : vector<1x128xf32>
    %60 = vector.extract_strided_slice %58 {offsets = [0, 0], sizes = [1, 32], strides = [1, 1]} : vector<1x128xf32> to vector<1x32xf32>
    %61 = vector.extract_strided_slice %58 {offsets = [0, 32], sizes = [1, 32], strides = [1, 1]} : vector<1x128xf32> to vector<1x32xf32>
    %62 = vector.extract_strided_slice %59 {offsets = [0, 64], sizes = [1, 32], strides = [1, 1]} : vector<1x128xf32> to vector<1x32xf32>
    %63 = vector.extract_strided_slice %58 {offsets = [0, 96], sizes = [1, 32], strides = [1, 1]} : vector<1x128xf32> to vector<1x32xf32>
    %64 = arith.mulf %61, %44 : vector<1x32xf32>
    %65 = arith.mulf %60, %62 : vector<1x32xf32>
    %66 = arith.addf %64, %65 : vector<1x32xf32>
    %67 = math.tanh %66 : vector<1x32xf32>
    %68 = arith.mulf %63, %67 : vector<1x32xf32>
    %c2_20 = arith.constant 2 : index
    %c0_21 = arith.constant 0 : index
    %69 = vector.load %arg7[%c2_20, %c0_21] : memref<8x32xf32, #tpu.memory_space<vmem>>, vector<1x32xf32>
    tpu.vector_store %arg7[%c2_20, %c0_21], %68 {strides = array<i32>} : memref<8x32xf32, #tpu.memory_space<vmem>>, vector<1x32xf32>,
    %c3 = arith.constant 3 : index
    %70 = memref.load %arg1[%c3] : memref<8xi32, #tpu.memory_space<smem>>
    %71 = arith.index_cast %70 : i32 to index
    %c0_22 = arith.constant 0 : index
    %72 = vector.load %arg2[%71, %c0_22] : memref<64x128xf32, #tpu.memory_space<vmem>>, vector<1x128xf32>
    %73 = arith.addf %72, %1 : vector<1x128xf32>
    %cst_23 = arith.constant dense<0.000000e+00> : vector<1x128xf32>
    %74 = tpu.matmul %68, %0, %cst_23 {dimension_numbers = #tpu.dot_dimension_numbers<[1], [0], [0], [1], [0, 0, 1, 1], [], []>} : vector<1x32xf32>, vector<32x128xf32>, vector<1x128xf32> -> vector<1x128xf32>
    %75 = arith.addf %73, %74 : vector<1x128xf32>
    %76 = arith.negf %75 : vector<1x128xf32>
    %77 = math.exp %76 : vector<1x128xf32>
    %cst_24 = arith.constant 1.000000e+00 : f32
    %78 = vector.broadcast %cst_24 : f32 to vector<1x128xf32>
    %79 = arith.addf %78, %77 : vector<1x128xf32>
    %80 = arith.divf %78, %79 : vector<1x128xf32>
    %81 = math.tanh %75 : vector<1x128xf32>
    %82 = vector.extract_strided_slice %80 {offsets = [0, 0], sizes = [1, 32], strides = [1, 1]} : vector<1x128xf32> to vector<1x32xf32>
    %83 = vector.extract_strided_slice %80 {offsets = [0, 32], sizes = [1, 32], strides = [1, 1]} : vector<1x128xf32> to vector<1x32xf32>
    %84 = vector.extract_strided_slice %81 {offsets = [0, 64], sizes = [1, 32], strides = [1, 1]} : vector<1x128xf32> to vector<1x32xf32>
    %85 = vector.extract_strided_slice %80 {offsets = [0, 96], sizes = [1, 32], strides = [1, 1]} : vector<1x128xf32> to vector<1x32xf32>
    %86 = arith.mulf %83, %66 : vector<1x32xf32>
    %87 = arith.mulf %82, %84 : vector<1x32xf32>
    %88 = arith.addf %86, %87 : vector<1x32xf32>
    %89 = math.tanh %88 : vector<1x32xf32>
    %90 = arith.mulf %85, %89 : vector<1x32xf32>
    %c3_25 = arith.constant 3 : index
    %c0_26 = arith.constant 0 : index
    %91 = vector.load %arg7[%c3_25, %c0_26] : memref<8x32xf32, #tpu.memory_space<vmem>>, vector<1x32xf32>
    tpu.vector_store %arg7[%c3_25, %c0_26], %90 {strides = array<i32>} : memref<8x32xf32, #tpu.memory_space<vmem>>, vector<1x32xf32>,
    %c4 = arith.constant 4 : index
    %92 = memref.load %arg1[%c4] : memref<8xi32, #tpu.memory_space<smem>>
    %93 = arith.index_cast %92 : i32 to index
    %c0_27 = arith.constant 0 : index
    %94 = vector.load %arg2[%93, %c0_27] : memref<64x128xf32, #tpu.memory_space<vmem>>, vector<1x128xf32>
    %95 = arith.addf %94, %1 : vector<1x128xf32>
    %cst_28 = arith.constant dense<0.000000e+00> : vector<1x128xf32>
    %96 = tpu.matmul %90, %0, %cst_28 {dimension_numbers = #tpu.dot_dimension_numbers<[1], [0], [0], [1], [0, 0, 1, 1], [], []>} : vector<1x32xf32>, vector<32x128xf32>, vector<1x128xf32> -> vector<1x128xf32>
    %97 = arith.addf %95, %96 : vector<1x128xf32>
    %98 = arith.negf %97 : vector<1x128xf32>
    %99 = math.exp %98 : vector<1x128xf32>
    %cst_29 = arith.constant 1.000000e+00 : f32
    %100 = vector.broadcast %cst_29 : f32 to vector<1x128xf32>
    %101 = arith.addf %100, %99 : vector<1x128xf32>
    %102 = arith.divf %100, %101 : vector<1x128xf32>
    %103 = math.tanh %97 : vector<1x128xf32>
    %104 = vector.extract_strided_slice %102 {offsets = [0, 0], sizes = [1, 32], strides = [1, 1]} : vector<1x128xf32> to vector<1x32xf32>
    %105 = vector.extract_strided_slice %102 {offsets = [0, 32], sizes = [1, 32], strides = [1, 1]} : vector<1x128xf32> to vector<1x32xf32>
    %106 = vector.extract_strided_slice %103 {offsets = [0, 64], sizes = [1, 32], strides = [1, 1]} : vector<1x128xf32> to vector<1x32xf32>
    %107 = vector.extract_strided_slice %102 {offsets = [0, 96], sizes = [1, 32], strides = [1, 1]} : vector<1x128xf32> to vector<1x32xf32>
    %108 = arith.mulf %105, %88 : vector<1x32xf32>
    %109 = arith.mulf %104, %106 : vector<1x32xf32>
    %110 = arith.addf %108, %109 : vector<1x32xf32>
    %111 = math.tanh %110 : vector<1x32xf32>
    %112 = arith.mulf %107, %111 : vector<1x32xf32>
    %c4_30 = arith.constant 4 : index
    %c0_31 = arith.constant 0 : index
    %113 = vector.load %arg7[%c4_30, %c0_31] : memref<8x32xf32, #tpu.memory_space<vmem>>, vector<1x32xf32>
    tpu.vector_store %arg7[%c4_30, %c0_31], %112 {strides = array<i32>} : memref<8x32xf32, #tpu.memory_space<vmem>>, vector<1x32xf32>,
    %c5 = arith.constant 5 : index
    %114 = memref.load %arg1[%c5] : memref<8xi32, #tpu.memory_space<smem>>
    %115 = arith.index_cast %114 : i32 to index
    %c0_32 = arith.constant 0 : index
    %116 = vector.load %arg2[%115, %c0_32] : memref<64x128xf32, #tpu.memory_space<vmem>>, vector<1x128xf32>
    %117 = arith.addf %116, %1 : vector<1x128xf32>
    %cst_33 = arith.constant dense<0.000000e+00> : vector<1x128xf32>
    %118 = tpu.matmul %112, %0, %cst_33 {dimension_numbers = #tpu.dot_dimension_numbers<[1], [0], [0], [1], [0, 0, 1, 1], [], []>} : vector<1x32xf32>, vector<32x128xf32>, vector<1x128xf32> -> vector<1x128xf32>
    %119 = arith.addf %117, %118 : vector<1x128xf32>
    %120 = arith.negf %119 : vector<1x128xf32>
    %121 = math.exp %120 : vector<1x128xf32>
    %cst_34 = arith.constant 1.000000e+00 : f32
    %122 = vector.broadcast %cst_34 : f32 to vector<1x128xf32>
    %123 = arith.addf %122, %121 : vector<1x128xf32>
    %124 = arith.divf %122, %123 : vector<1x128xf32>
    %125 = math.tanh %119 : vector<1x128xf32>
    %126 = vector.extract_strided_slice %124 {offsets = [0, 0], sizes = [1, 32], strides = [1, 1]} : vector<1x128xf32> to vector<1x32xf32>
    %127 = vector.extract_strided_slice %124 {offsets = [0, 32], sizes = [1, 32], strides = [1, 1]} : vector<1x128xf32> to vector<1x32xf32>
    %128 = vector.extract_strided_slice %125 {offsets = [0, 64], sizes = [1, 32], strides = [1, 1]} : vector<1x128xf32> to vector<1x32xf32>
    %129 = vector.extract_strided_slice %124 {offsets = [0, 96], sizes = [1, 32], strides = [1, 1]} : vector<1x128xf32> to vector<1x32xf32>
    %130 = arith.mulf %127, %110 : vector<1x32xf32>
    %131 = arith.mulf %126, %128 : vector<1x32xf32>
    %132 = arith.addf %130, %131 : vector<1x32xf32>
    %133 = math.tanh %132 : vector<1x32xf32>
    %134 = arith.mulf %129, %133 : vector<1x32xf32>
    %c5_35 = arith.constant 5 : index
    %c0_36 = arith.constant 0 : index
    %135 = vector.load %arg7[%c5_35, %c0_36] : memref<8x32xf32, #tpu.memory_space<vmem>>, vector<1x32xf32>
    tpu.vector_store %arg7[%c5_35, %c0_36], %134 {strides = array<i32>} : memref<8x32xf32, #tpu.memory_space<vmem>>, vector<1x32xf32>,
    %c6 = arith.constant 6 : index
    %136 = memref.load %arg1[%c6] : memref<8xi32, #tpu.memory_space<smem>>
    %137 = arith.index_cast %136 : i32 to index
    %c0_37 = arith.constant 0 : index
    %138 = vector.load %arg2[%137, %c0_37] : memref<64x128xf32, #tpu.memory_space<vmem>>, vector<1x128xf32>
    %139 = arith.addf %138, %1 : vector<1x128xf32>
    %cst_38 = arith.constant dense<0.000000e+00> : vector<1x128xf32>
    %140 = tpu.matmul %134, %0, %cst_38 {dimension_numbers = #tpu.dot_dimension_numbers<[1], [0], [0], [1], [0, 0, 1, 1], [], []>} : vector<1x32xf32>, vector<32x128xf32>, vector<1x128xf32> -> vector<1x128xf32>
    %141 = arith.addf %139, %140 : vector<1x128xf32>
    %142 = arith.negf %141 : vector<1x128xf32>
    %143 = math.exp %142 : vector<1x128xf32>
    %cst_39 = arith.constant 1.000000e+00 : f32
    %144 = vector.broadcast %cst_39 : f32 to vector<1x128xf32>
    %145 = arith.addf %144, %143 : vector<1x128xf32>
    %146 = arith.divf %144, %145 : vector<1x128xf32>
    %147 = math.tanh %141 : vector<1x128xf32>
    %148 = vector.extract_strided_slice %146 {offsets = [0, 0], sizes = [1, 32], strides = [1, 1]} : vector<1x128xf32> to vector<1x32xf32>
    %149 = vector.extract_strided_slice %146 {offsets = [0, 32], sizes = [1, 32], strides = [1, 1]} : vector<1x128xf32> to vector<1x32xf32>
    %150 = vector.extract_strided_slice %147 {offsets = [0, 64], sizes = [1, 32], strides = [1, 1]} : vector<1x128xf32> to vector<1x32xf32>
    %151 = vector.extract_strided_slice %146 {offsets = [0, 96], sizes = [1, 32], strides = [1, 1]} : vector<1x128xf32> to vector<1x32xf32>
    %152 = arith.mulf %149, %132 : vector<1x32xf32>
    %153 = arith.mulf %148, %150 : vector<1x32xf32>
    %154 = arith.addf %152, %153 : vector<1x32xf32>
    %155 = math.tanh %154 : vector<1x32xf32>
    %156 = arith.mulf %151, %155 : vector<1x32xf32>
    %c6_40 = arith.constant 6 : index
    %c0_41 = arith.constant 0 : index
    %157 = vector.load %arg7[%c6_40, %c0_41] : memref<8x32xf32, #tpu.memory_space<vmem>>, vector<1x32xf32>
    tpu.vector_store %arg7[%c6_40, %c0_41], %156 {strides = array<i32>} : memref<8x32xf32, #tpu.memory_space<vmem>>, vector<1x32xf32>,
    %c7 = arith.constant 7 : index
    %158 = memref.load %arg1[%c7] : memref<8xi32, #tpu.memory_space<smem>>
    %159 = arith.index_cast %158 : i32 to index
    %c0_42 = arith.constant 0 : index
    %160 = vector.load %arg2[%159, %c0_42] : memref<64x128xf32, #tpu.memory_space<vmem>>, vector<1x128xf32>
    %161 = arith.addf %160, %1 : vector<1x128xf32>
    %cst_43 = arith.constant dense<0.000000e+00> : vector<1x128xf32>
    %162 = tpu.matmul %156, %0, %cst_43 {dimension_numbers = #tpu.dot_dimension_numbers<[1], [0], [0], [1], [0, 0, 1, 1], [], []>} : vector<1x32xf32>, vector<32x128xf32>, vector<1x128xf32> -> vector<1x128xf32>
    %163 = arith.addf %161, %162 : vector<1x128xf32>
    %164 = arith.negf %163 : vector<1x128xf32>
    %165 = math.exp %164 : vector<1x128xf32>
    %cst_44 = arith.constant 1.000000e+00 : f32
    %166 = vector.broadcast %cst_44 : f32 to vector<1x128xf32>
    %167 = arith.addf %166, %165 : vector<1x128xf32>
    %168 = arith.divf %166, %167 : vector<1x128xf32>
    %169 = math.tanh %163 : vector<1x128xf32>
    %170 = vector.extract_strided_slice %168 {offsets = [0, 0], sizes = [1, 32], strides = [1, 1]} : vector<1x128xf32> to vector<1x32xf32>
    %171 = vector.extract_strided_slice %168 {offsets = [0, 32], sizes = [1, 32], strides = [1, 1]} : vector<1x128xf32> to vector<1x32xf32>
    %172 = vector.extract_strided_slice %169 {offsets = [0, 64], sizes = [1, 32], strides = [1, 1]} : vector<1x128xf32> to vector<1x32xf32>
    %173 = vector.extract_strided_slice %168 {offsets = [0, 96], sizes = [1, 32], strides = [1, 1]} : vector<1x128xf32> to vector<1x32xf32>
    %174 = arith.mulf %171, %154 : vector<1x32xf32>
    %175 = arith.mulf %170, %172 : vector<1x32xf32>
    %176 = arith.addf %174, %175 : vector<1x32xf32>
    %177 = math.tanh %176 : vector<1x32xf32>
    %178 = arith.mulf %173, %177 : vector<1x32xf32>
    %c7_45 = arith.constant 7 : index
    %c0_46 = arith.constant 0 : index
    %179 = vector.load %arg7[%c7_45, %c0_46] : memref<8x32xf32, #tpu.memory_space<vmem>>, vector<1x32xf32>
    tpu.vector_store %arg7[%c7_45, %c0_46], %178 {strides = array<i32>} : memref<8x32xf32, #tpu.memory_space<vmem>>, vector<1x32xf32>,
    %c0_47 = arith.constant 0 : index
    %c0_48 = arith.constant 0 : index
    %180 = vector.load %arg8[%c0_47, %c0_48] : memref<1x32xf32, #tpu.memory_space<vmem>>, vector<1x32xf32>
    tpu.vector_store %arg8[%c0_47, %c0_48], %178 {strides = array<i32>} : memref<1x32xf32, #tpu.memory_space<vmem>>, vector<1x32xf32>,
    %c0_49 = arith.constant 0 : index
    %c0_50 = arith.constant 0 : index
    %181 = vector.load %arg9[%c0_49, %c0_50] : memref<1x32xf32, #tpu.memory_space<vmem>>, vector<1x32xf32>
    tpu.vector_store %arg9[%c0_49, %c0_50], %176 {strides = array<i32>} : memref<1x32xf32, #tpu.memory_space<vmem>>, vector<1x32xf32>,
    return
  }
  func.func @transform_0(%arg0: i32, %arg1: memref<8xi32, #tpu.memory_space<smem>>) -> (i32, i32) {
    %c0_i32 = arith.constant 0 : i32
    %c0_i32_0 = arith.constant 0 : i32
    %c0_i32_1 = arith.constant 0 : i32
    return %c0_i32, %c0_i32_0 : i32, i32
  }
  func.func @transform_1(%arg0: i32, %arg1: memref<8xi32, #tpu.memory_space<smem>>) -> (i32, i32) {
    %c0_i32 = arith.constant 0 : i32
    %c0_i32_0 = arith.constant 0 : i32
    %c0_i32_1 = arith.constant 0 : i32
    return %c0_i32, %c0_i32_0 : i32, i32
  }
  func.func @transform_2(%arg0: i32, %arg1: memref<8xi32, #tpu.memory_space<smem>>) -> (i32, i32) {
    %c0_i32 = arith.constant 0 : i32
    %c0_i32_0 = arith.constant 0 : i32
    %c0_i32_1 = arith.constant 0 : i32
    return %c0_i32, %c0_i32_0 : i32, i32
  }
  func.func @transform_3(%arg0: i32, %arg1: memref<8xi32, #tpu.memory_space<smem>>) -> (i32, i32) {
    %c0_i32 = arith.constant 0 : i32
    %c0_i32_0 = arith.constant 0 : i32
    %c0_i32_1 = arith.constant 0 : i32
    return %c0_i32, %c0_i32_0 : i32, i32
  }
  func.func @transform_4(%arg0: i32, %arg1: memref<8xi32, #tpu.memory_space<smem>>) -> (i32, i32) {
    %c0_i32 = arith.constant 0 : i32
    %c0_i32_0 = arith.constant 0 : i32
    %c0_i32_1 = arith.constant 0 : i32
    return %c0_i32, %c0_i32_0 : i32, i32
  }
  func.func @transform_5(%arg0: i32, %arg1: memref<8xi32, #tpu.memory_space<smem>>) -> (i32, i32) {
    %c0_i32 = arith.constant 0 : i32
    %c0_i32_0 = arith.constant 0 : i32
    %c0_i32_1 = arith.constant 0 : i32
    return %c0_i32, %c0_i32_0 : i32, i32
  }
  func.func @transform_6(%arg0: i32, %arg1: memref<8xi32, #tpu.memory_space<smem>>) -> (i32, i32) {
    %c0_i32 = arith.constant 0 : i32
    %c0_i32_0 = arith.constant 0 : i32
    %c0_i32_1 = arith.constant 0 : i32
    return %c0_i32, %c0_i32_0 : i32, i32
  }
  func.func @transform_7(%arg0: i32, %arg1: memref<8xi32, #tpu.memory_space<smem>>) -> (i32, i32) {
    %c0_i32 = arith.constant 0 : i32
    %c0_i32_0 = arith.constant 0 : i32
    %c0_i32_1 = arith.constant 0 : i32
    return %c0_i32, %c0_i32_0 : i32, i32
  }
}

</mosaic_0001>

<bundles_post_ra>
// kernel: tpu_custom_call.1
= control target key start
LH: loop header
LB: loop body
LE: loop exit
PB: predicated region body
PF: predicated region fallthrough
CT: control target
= control target key end

     0   :  { %s1657_s0 = inlined_call_operand.hbm [shape: s32[8], index: 0, kind: input, shape index: {}]   ;;  %s1658_s1 = inlined_call_operand.hbm [shape: f32[64,128], index: 1, kind: input, shape index: {}]   ;;  %s1659_s2 = inlined_call_operand.hbm [shape: f32[32,128], index: 2, kind: input, shape index: {}]   ;;  %s1660_s3 = inlined_call_operand.vmem [shape: f32[1,128], index: 3, kind: input, shape index: {}]   ;;  %s1661_s4 = inlined_call_operand.vmem [shape: f32[1,32], index: 4, kind: input, shape index: {}]   ;;  %s1662_s5 = inlined_call_operand.vmem [shape: f32[1,32], index: 5, kind: input, shape index: {}]   ;;  %s1663_s6 = inlined_call_operand.hbm [shape: f32[8,32], index: 6, kind: output, shape index: {0}]   ;;  %s1664_s7 = inlined_call_operand.hbm [shape: f32[1,32], index: 7, kind: output, shape index: {1}]   ;;  %s1665_s8 = inlined_call_operand.hbm [shape: f32[1,32], index: 8, kind: output, shape index: {2}]  }
   0x1   :  { %s1259_s29 = scalar_lea.hbm %s1657_s0, 16 }
   0x2   :  { %p1260_p0 = scmp.ne.s32.totalorder %s1657_s0, %s1259_s29  ;;  %p1263_p1 = scmp.lt.u32.totalorder %s1259_s29, %s1657_s0 }
   0x4   :  { %p1265_p2 = pnand %p1263_p1, %p1260_p0 }
   0x6   :  { %1268 = shalt.err (!%p1265_p2)  }
   0x7   :  { %s1389_s12 = smov [#allocation3]  }
   0x8   :  { %15 = dma.hbm_to_smem %s1657_s0, 16, %s1389_s12, [#allocation2] }
   0x9   :  { %1379 = dma.done.wait [#allocation2], 16 }
   0xa   :  { %1380 = vsyncadd [#allocation2], 4294967280 }
   0xb   :  { %17 = sfence }
   0xc   :  { %18 = vsyncpa [#allocation5], 0 }
   0xd   :  { %19 = vsyncpa [#allocation8], 0 }
   0xe   :  { %20 = vsyncpa [#allocation6], 0 }
   0xf   :  { %21 = vsyncpa [#allocation11], 0  ;;  %s1390_s15 = smov [#allocation4]   ;;  %s1269_s19 = scalar_lea.hbm %s1658_s1, 1024 }
  0x10   :  { %s27_s16 = sshll.u32 %s1390_s15, 4  ;;  %p1270_p3 = scmp.ne.s32.totalorder %s1658_s1, %s1269_s19  ;;  %s28_s16 = int_to_ptr.vmem [resolvable:$true] %s27_s16 }
  0x11   :  { %p1273_p4 = scmp.lt.u32.totalorder %s1269_s19, %s1658_s1 }
  0x13   :  { %p1275_p5 = pnand %p1273_p4, %p1270_p3 }
  0x15   :  { %1278 = shalt.err (!%p1275_p5)
}
  0x16   :  { %s1279_s23 = scalar_lea.vmem %s28_s16, 1024  ;;  %p1284_p7 = scmp.lt.s32.totalorder %s28_s16, %s28_s16 }
  0x17   :  { %p1280_p6 = scmp.ne.s32.totalorder %s28_s16, %s1279_s23  ;;  %p1285_p8 = scmp.lt.s32.totalorder %s1279_s23, %s1279_s23 }
  0x19   :  { %p1286_p9 = por %p1285_p8, %p1284_p7 }
  0x1b   :  { %p1287_p10 = pnand %p1286_p9, %p1280_p6 }
  0x1d   :  { %1290 = shalt.err (!%p1287_p10)
}
  0x1e   :  { %s1391_s24 = smov 128   ;;  %s1392_s25 = smov 8  }
  0x1f   :  { %33 = dma.hbm_to_vmem [thread:$0]  %s1658_s1, 1024, %s28_s16, [#allocation5], %s1391_s24, %s1391_s24, %s1392_s25  }
  0x20   :  { %s1393_s28 = smov [#allocation7]   ;;  %s1291_s10 = scalar_lea.hbm %s1659_s2, 512 }
  0x21   :  { %s39_s29 = sshll.u32 %s1393_s28, 4  ;;  %p1292_p11 = scmp.ne.s32.totalorder %s1659_s2, %s1291_s10  ;;  %s40_s29 = int_to_ptr.vmem [resolvable:$true] %s39_s29 }
  0x22   :  { %p1295_p12 = scmp.lt.u32.totalorder %s1291_s10, %s1659_s2 }
  0x24   :  { %p1297_p13 = pnand %p1295_p12, %p1292_p11 }
  0x26   :  { %1300 = shalt.err (!%p1297_p13)
}
  0x27   :  { %s1301_s15 = scalar_lea.vmem %s40_s29, 512  ;;  %p1306_p1 = scmp.lt.s32.totalorder %s40_s29, %s40_s29 }
  0x28   :  { %p1302_p0 = scmp.ne.s32.totalorder %s40_s29, %s1301_s15  ;;  %p1307_p2 = scmp.lt.s32.totalorder %s1301_s15, %s1301_s15 }
  0x2a   :  { %p1308_p3 = por %p1307_p2, %p1306_p1 }
  0x2c   :  { %p1309_p4 = pnand %p1308_p3, %p1302_p0 }
  0x2e   :  { %1312 = shalt.err (!%p1309_p4)
}
  0x2f   :  { %45 = dma.hbm_to_vmem [thread:$0]  %s1659_s2, 512, %s40_s29, [#allocation8], %s1391_s24, %s1391_s24, %s1392_s25  }
  0x30   :  { %1381 = dma.done.wait [#allocation5], 1024  }
  0x31   :  { %1382 = vsyncadd [#allocation5], 4294966272 }
  0x32   :  { %1383 = dma.done.wait [#allocation8], 512  }
  0x33   :  { %1384 = vsyncadd [#allocation8], 4294966784  ;;  %v1394_v0 = vmov 0.0|0.0   ;;  %vm1395_vm0 = vmmov 0   ;;  %v1396_v1 = vmov 0.0   ;;  %v58_v2 = vld [vmem:[#allocation7] sm:$0xff] }
  0x34   :  { %1133 = vmatprep.subr.bf16.mxu0 %v1394_v0  ;;  %1053 = vmatprep.mubr.msk.f32.mxu0 %vm1395_vm0, %v1396_v1  ;;  %v59_v3 = vld [vmem:[#allocation7 + $0x8] sm:$0xff]  ;;  %v60_v4 = vld [vmem:[#allocation7 + $0x10] sm:$0xff]  ;;  %v61_v6 = vld [vmem:[#allocation7 + $0x18] sm:$0xff]  ;;  %vm69_vm1 = vcmask 261120   ;;  %s1397_s21 = smov 64   ;;  %s1398_s23 = smov 32  }
  0x35   :  { %1139 = vmatprep.subr.bf16.mxu1 %v1394_v0  ;;  %1064 = vmatprep.mubr.msk.f32.mxu1 %vm1395_vm0, %v1396_v1  ;;  %v1490_v5 = vpack.c.bf16 %v59_v3, %v58_v2  ;;  %v1493_v7 = vpack.c.bf16 %v61_v6, %v60_v4  ;;  %v63_v8 = vld [vmem:[%s1661_s4] sm:$0x1]  ;;  %s65_s4 = sld [smem:[#allocation3]]  ;;  %vm180_vm2 = vcmask 253952   ;;  %s987_s24 = sld [smem:[#allocation3 + $0x2]] }
  0x36   :  { %v1515_v9 = vld [vmem:[%s1660_s3] sm:$0x1]  ;;  %s984_s3 = sld [smem:[#allocation3 + $0x1]]  ;;  %s990_s26 = sld [smem:[#allocation3 + $0x3]] }
  0x37   :  { %1135 = vmatpush3.bf16.msra.mxu0 %v1490_v5  ;;  %1141 = vmatpush3.bf16.msra.mxu1 %v1490_v5  ;;  %v983_v16 = vld [vmem:[%s1662_s5] ss:$0 sm:$0xff]  ;;  %s993_s28 = sld [smem:[#allocation3 + $0x4]]  ;;  %s996_s30 = sld [smem:[#allocation3 + $0x5]] }
  0x38   :  { %1136 = vmatprep.subr.bf16.mxu0 %v1394_v0  ;;  %1142 = vmatprep.subr.bf16.mxu1 %v1394_v0  ;;  %s999_s10 = sld [smem:[#allocation3 + $0x6]]  ;;  %s1002_s12 = sld [smem:[#allocation3 + $0x7]] }
  0x39   :  { %s1399_s14 = smov 96   ;;  %s1400_s15 = smov [#allocation10]  }
  0x3a   :  { %s946_s1 = sshll.u32 %s1400_s15, 4  ;;  %s1401_s16 = smov [#allocation9]   ;;  %s947_s1 = int_to_ptr.vmem [resolvable:$true] %s946_s1 }
  0x3b   :  { %1138 = vmatpush3.bf16.msra.mxu0 %v1493_v7  ;;  %1144 = vmatpush3.bf16.msra.mxu1 %v1493_v7  ;;  %s66_s20 = scalar_lea.vmem [#allocation4], %s65_s4  ;;  %s289_s25 = scalar_lea.vmem [#allocation4], %s987_s24 }
  0x3c   :  { %1145 = vmatprep.subr.bf16.mxu0 %v1394_v0  ;;  %1151 = vmatprep.subr.bf16.mxu1 %v1394_v0  ;;  %v67_v10 = vld [vmem:[%s66_s20] sm:$0x1]  ;;  %s183_s5 = scalar_lea.vmem [#allocation4], %s984_s3  ;;  %s395_s27 = scalar_lea.vmem [#allocation4], %s990_s26 }
  0x3d   :  { %v68_v11 = vadd.f32 %v67_v10, %v1515_v9  ;;  %v184_v31 = vld [vmem:[%s183_s5] sm:$0x1]  ;;  %s501_s29 = scalar_lea.vmem [#allocation4], %s993_s28  ;;  %s607_s9 = scalar_lea.vmem [#allocation4], %s996_s30 }
  0x3e   :  { %1054 = vmatmul.mubr.msk.f32.vlgmr.msra.gmra.mrb[0].mxu0 %vm69_vm1, %v63_v8  ;;  %v185_v32 = vadd.f32 %v184_v31, %v1515_v9  ;;  %v290_v50 = vld [vmem:[%s289_s25] sm:$0x1]  ;;  %s713_s11 = scalar_lea.vmem [#allocation4], %s999_s10  ;;  %s819_s13 = scalar_lea.vmem [#allocation4], %s1002_s12 }
  0x3f   :  { %1147 = vmatpush3.bf16.msra.mxu0 %v1490_v5  ;;  %1075 = vmatprep.mubr.msk.f32.mxu0 %vm1395_vm0, %v1396_v1  ;;  %v291_v51 = vadd.f32 %v290_v50, %v1515_v9  ;;  %v396_v10 = vld [vmem:[%s395_s27] sm:$0x1]  ;;  %s936_s2 = sshll.u32 %s1401_s16, 4  ;;  %s1402_s17 = smov [#allocation12]   ;;  %s1604_s2 = int_to_ptr.vmem [resolvable:$true] %s936_s2 }
  0x40   :  { %1148 = vmatprep.subr.bf16.mxu0 %v1394_v0  ;;  %s956_s4 = sshll.u32 %s1402_s17, 4  ;;  %s1313_s18 = scalar_lea.vmem %s947_s1, 16  ;;  %s1608_s4 = int_to_ptr.vmem [resolvable:$true] %s956_s4 }
  0x41   :  { %p1314_p5 = scmp.ne.s32.totalorder %s947_s1, %s1313_s18  ;;  %s1317_s19 = scalar_lea.vmem %s947_s1, 32 }
  0x42   :  { %p1318_p6 = scmp.lt.s32.totalorder %s947_s1, %s947_s1  ;;  %p1319_p7 = scmp.lt.s32.totalorder %s1317_s19, %s1313_s18 }
  0x43   :  { %1150 = vmatpush3.bf16.msra.mxu0 %v1493_v7 }
  0x44   :  { %1157 = vmatprep.subr.bf16.mxu0 %v1394_v0  ;;  %p1320_p8 = por %p1319_p7, %p1318_p6 }
  0x46   :  { %p1321_p9 = pnand %p1320_p8, %p1314_p5 }
 0x111   :  { %v139_v12 = vpop.f32.mrb[0].mxu0 }
 0x112   :  { %v143_v13 = vadd.f32 %v139_v12, %v68_v11  ;;  %v1055_v14 = vpop.f32.mrb[1].mxu0  ;;  %v397_v11 = vadd.f32 %v396_v10, %v1515_v9 }
 0x114   :  { %1195 = vtanh.f32 %v143_v13  ;;  %v982_v17 = vmul.f32 -1.442695, %v143_v13 }
 0x116   :  { %1197 = vpow2.f32 %v982_v17 }
 0x11e   :  { %v1196_v15 = vpop.eup %1195 }
 0x11f   :  { %161 = vrot.lane.b32.xlu0 %v1196_v15, %s1397_s21 }
 0x120   :  { %v1198_v18 = vpop.eup %1197 }
 0x121   :  { %v147_v19 = vadd.f32 1.0, %v1198_v18 }
 0x123   :  { %156 = vrot.lane.b32.xlu0 %v983_v16, %s1398_s23  ;;  %1199 = vrcp.f32 %v147_v19 }
 0x12d   :  { %v1200_v20 = vpop.eup %1199 }
 0x191   :  { %v162_v21 = vpop.permute.xlu0 %161 }
 0x192   :  { %v164_v22 = vmul.f32 %v1200_v20, %v162_v21 }
 0x194   :  { %166 = vrot.lane.b32.xlu1 %v164_v22, %s1398_s23 }
 0x195   :  { %v157_v23 = vpop.permute.xlu0 %156 }
 0x196   :  { %v159_v24 = vmul.f32 %v1200_v20, %v157_v23 }
 0x206   :  { %v167_v25 = vpop.permute.xlu1 %166 }
 0x207   :  { %v169_v26 = vadd.f32 %v167_v25, %v159_v24 }
 0x209   :  { %1201 = vtanh.f32 %v169_v26 }
 0x213   :  { %v1202_v27 = vpop.eup %1201 }
 0x214   :  { %172 = vrot.lane.b32.xlu1 %v1202_v27, %s1397_s21 }
 0x286   :  { %v173_v28 = vpop.permute.xlu1 %172 }
 0x287   :  { %v175_v29 = vmul.f32 %v1200_v20, %v173_v28 }
 0x289   :  { %177 = vrot.lane.b32.xlu0 %v175_v29, %s1398_s23  ;;  %v502_v29 = vld [vmem:[%s501_s29] sm:$0x1] }
 0x2fb   :  { %v178_v30 = vpop.permute.xlu0 %177 }
 0x2fc   :  { %181 = vst.msk [vmem:[#allocation9] sm:$0x1] %vm180_vm2, %v178_v30  ;;  %1065 = vmatmul.mubr.msk.f32.vlgmr.msra.gmra.mrb[0].mxu1 %vm69_vm1, %v178_v30  ;;  %v503_v30 = vadd.f32 %v502_v29, %v1515_v9 }
 0x2fd   :  { %1153 = vmatpush3.bf16.msra.mxu1 %v1490_v5  ;;  %1086 = vmatprep.mubr.msk.f32.mxu1 %vm1395_vm0, %v1396_v1 }
 0x2fe   :  { %1154 = vmatprep.subr.bf16.mxu1 %v1394_v0 }
 0x301   :  { %1156 = vmatpush3.bf16.msra.mxu1 %v1493_v7 }
 0x302   :  { %1163 = vmatprep.subr.bf16.mxu1 %v1394_v0 }
 0x3cf   :  { %v254_v33 = vpop.f32.mrb[0].mxu1 }
 0x3d0   :  { %v258_v34 = vadd.f32 %v254_v33, %v185_v32  ;;  %v1066_v35 = vpop.f32.mrb[1].mxu1 }
 0x3d2   :  { %1203 = vtanh.f32 %v258_v34  ;;  %v986_v37 = vmul.f32 -1.442695, %v258_v34 }
 0x3d4   :  { %1205 = vpow2.f32 %v986_v37 }
 0x3dc   :  { %v1204_v36 = vpop.eup %1203 }
 0x3dd   :  { %268 = vrot.lane.b32.xlu1 %v1204_v36, %s1397_s21 }
 0x3de   :  { %v1206_v38 = vpop.eup %1205 }
 0x3df   :  { %v262_v39 = vadd.f32 1.0, %v1206_v38 }
 0x3e1   :  { %1207 = vrcp.f32 %v262_v39 }
 0x3eb   :  { %v1208_v40 = vpop.eup %1207 }
 0x3ec   :  { %v266_v43 = vmul.f32 %v1208_v40, %v169_v26 }
 0x44f   :  { %v269_v41 = vpop.permute.xlu1 %268 }
 0x450   :  { %v271_v42 = vmul.f32 %v1208_v40, %v269_v41 }
 0x452   :  { %273 = vrot.lane.b32.xlu0 %v271_v42, %s1398_s23 }
 0x4c4   :  { %v274_v44 = vpop.permute.xlu0 %273 }
 0x4c5   :  { %v276_v45 = vadd.f32 %v274_v44, %v266_v43 }
 0x4c7   :  { %1209 = vtanh.f32 %v276_v45 }
 0x4d1   :  { %v1210_v46 = vpop.eup %1209 }
 0x4d2   :  { %279 = vrot.lane.b32.xlu1 %v1210_v46, %s1397_s21 }
 0x544   :  { %v280_v47 = vpop.permute.xlu1 %279 }
 0x545   :  { %v282_v48 = vmul.f32 %v1208_v40, %v280_v47 }
 0x547   :  { %284 = vrot.lane.b32.xlu0 %v282_v48, %s1398_s23  ;;  %v608_v48 = vld [vmem:[%s607_s9] sm:$0x1] }
 0x5b9   :  { %v285_v49 = vpop.permute.xlu0 %284 }
 0x5ba   :  { %287 = vst.msk [vmem:[#allocation9 + $0x1] sm:$0x1] %vm180_vm2, %v285_v49  ;;  %1076 = vmatmul.mubr.msk.f32.vlgmr.msra.gmra.mrb[2].mxu0 %vm69_vm1, %v285_v49  ;;  %v609_v49 = vadd.f32 %v608_v48, %v1515_v9 }
 0x5bb   :  { %1159 = vmatpush3.bf16.msra.mxu0 %v1490_v5  ;;  %1097 = vmatprep.mubr.msk.f32.mxu0 %vm1395_vm0, %v1396_v1 }
 0x5bc   :  { %1160 = vmatprep.subr.bf16.mxu0 %v1394_v0 }
 0x5bf   :  { %1162 = vmatpush3.bf16.msra.mxu0 %v1493_v7 }
 0x5c0   :  { %1169 = vmatprep.subr.bf16.mxu0 %v1394_v0 }
 0x68d   :  { %v360_v52 = vpop.f32.mrb[2].mxu0 }
 0x68e   :  { %v364_v53 = vadd.f32 %v360_v52, %v291_v51  ;;  %v1077_v54 = vpop.f32.mrb[3].mxu0 }
 0x690   :  { %1211 = vtanh.f32 %v364_v53  ;;  %v989_v56 = vmul.f32 -1.442695, %v364_v53 }
 0x692   :  { %1213 = vpow2.f32 %v989_v56 }
 0x69a   :  { %v1212_v55 = vpop.eup %1211 }
 0x69b   :  { %374 = vrot.lane.b32.xlu1 %v1212_v55, %s1397_s21 }
 0x69c   :  { %v1214_v57 = vpop.eup %1213 }
 0x69d   :  { %v368_v58 = vadd.f32 1.0, %v1214_v57 }
 0x69f   :  { %1215 = vrcp.f32 %v368_v58 }
 0x6a9   :  { %v1216_v59 = vpop.eup %1215 }
 0x6aa   :  { %v372_v62 = vmul.f32 %v1216_v59, %v276_v45 }
 0x70d   :  { %v375_v60 = vpop.permute.xlu1 %374 }
 0x70e   :  { %v377_v61 = vmul.f32 %v1216_v59, %v375_v60 }
 0x710   :  { %379 = vrot.lane.b32.xlu0 %v377_v61, %s1398_s23 }
 0x782   :  { %v380_v63 = vpop.permute.xlu0 %379 }
 0x783   :  { %v382_v2 = vadd.f32 %v380_v63, %v372_v62  ;;  %v714_v63 = vld [vmem:[%s713_s11] sm:$0x1] }
 0x785   :  { %1217 = vtanh.f32 %v382_v2 }
 0x78f   :  { %v1218_v3 = vpop.eup %1217 }
 0x790   :  { %385 = vrot.lane.b32.xlu1 %v1218_v3, %s1397_s21 }
 0x802   :  { %v386_v4 = vpop.permute.xlu1 %385 }
 0x803   :  { %v388_v6 = vmul.f32 %v1216_v59, %v386_v4 }
 0x805   :  { %390 = vrot.lane.b32.xlu0 %v388_v6, %s1398_s23 }
 0x877   :  { %v391_v8 = vpop.permute.xlu0 %390 }
 0x878   :  { %393 = vst.msk [vmem:[#allocation9 + $0x2] sm:$0x1] %vm180_vm2, %v391_v8  ;;  %1087 = vmatmul.mubr.msk.f32.vlgmr.msra.gmra.mrb[2].mxu1 %vm69_vm1, %v391_v8 }
 0x879   :  { %1165 = vmatpush3.bf16.msra.mxu1 %v1490_v5  ;;  %1108 = vmatprep.mubr.msk.f32.mxu1 %vm1395_vm0, %v1396_v1 }
 0x87a   :  { %1166 = vmatprep.subr.bf16.mxu1 %v1394_v0 }
 0x87d   :  { %1168 = vmatpush3.bf16.msra.mxu1 %v1493_v7 }
 0x87e   :  { %1175 = vmatprep.subr.bf16.mxu1 %v1394_v0 }
 0x94b   :  { %v466_v12 = vpop.f32.mrb[2].mxu1 }
 0x94c   :  { %v470_v13 = vadd.f32 %v466_v12, %v397_v11  ;;  %v1088_v14 = vpop.f32.mrb[3].mxu1 }
 0x94e   :  { %1219 = vtanh.f32 %v470_v13  ;;  %v992_v16 = vmul.f32 -1.442695, %v470_v13 }
 0x950   :  { %1221 = vpow2.f32 %v992_v16 }
 0x958   :  { %v1220_v15 = vpop.eup %1219 }
 0x959   :  { %480 = vrot.lane.b32.xlu1 %v1220_v15, %s1397_s21 }
 0x95a   :  { %v1222_v17 = vpop.eup %1221 }
 0x95b   :  { %v474_v18 = vadd.f32 1.0, %v1222_v17 }
 0x95d   :  { %1223 = vrcp.f32 %v474_v18 }
 0x967   :  { %v1224_v19 = vpop.eup %1223 }
 0x968   :  { %v478_v22 = vmul.f32 %v1224_v19, %v382_v2  ;;  %v715_v2 = vadd.f32 %v714_v63, %v1515_v9 }
 0x9cb   :  { %v481_v20 = vpop.permute.xlu1 %480 }
 0x9cc   :  { %v483_v21 = vmul.f32 %v1224_v19, %v481_v20 }
 0x9ce   :  { %485 = vrot.lane.b32.xlu0 %v483_v21, %s1398_s23 }
 0xa40   :  { %v486_v23 = vpop.permute.xlu0 %485 }
 0xa41   :  { %v488_v24 = vadd.f32 %v486_v23, %v478_v22  ;;  %v820_v23 = vld [vmem:[%s819_s13] sm:$0x1] }
 0xa43   :  { %1225 = vtanh.f32 %v488_v24 }
 0xa4d   :  { %v1226_v25 = vpop.eup %1225 }
 0xa4e   :  { %491 = vrot.lane.b32.xlu1 %v1226_v25, %s1397_s21 }
 0xac0   :  { %v492_v26 = vpop.permute.xlu1 %491 }
 0xac1   :  { %v494_v27 = vmul.f32 %v1224_v19, %v492_v26 }
 0xac3   :  { %496 = vrot.lane.b32.xlu0 %v494_v27, %s1398_s23 }
 0xb35   :  { %v497_v28 = vpop.permute.xlu0 %496 }
 0xb36   :  { %499 = vst.msk [vmem:[#allocation9 + $0x3] sm:$0x1] %vm180_vm2, %v497_v28  ;;  %1098 = vmatmul.mubr.msk.f32.vlgmr.msra.gmra.mrb[4].mxu0 %vm69_vm1, %v497_v28 }
 0xb37   :  { %1171 = vmatpush3.bf16.msra.mxu0 %v1490_v5  ;;  %1119 = vmatprep.mubr.msk.f32.mxu0 %vm1395_vm0, %v1396_v1 }
 0xb38   :  { %1172 = vmatprep.subr.bf16.mxu0 %v1394_v0 }
 0xb3b   :  { %1174 = vmatpush3.bf16.msra.mxu0 %v1493_v7 }
 0xc09   :  { %v572_v31 = vpop.f32.mrb[4].mxu0 }
 0xc0a   :  { %v576_v32 = vadd.f32 %v572_v31, %v503_v30  ;;  %v1099_v33 = vpop.f32.mrb[5].mxu0 }
 0xc0c   :  { %1227 = vtanh.f32 %v576_v32  ;;  %v995_v35 = vmul.f32 -1.442695, %v576_v32 }
 0xc0e   :  { %1229 = vpow2.f32 %v995_v35 }
 0xc16   :  { %v1228_v34 = vpop.eup %1227 }
 0xc17   :  { %586 = vrot.lane.b32.xlu1 %v1228_v34, %s1397_s21 }
 0xc18   :  { %v1230_v36 = vpop.eup %1229 }
 0xc19   :  { %v580_v37 = vadd.f32 1.0, %v1230_v36 }
 0xc1b   :  { %1231 = vrcp.f32 %v580_v37 }
 0xc25   :  { %v1232_v38 = vpop.eup %1231 }
 0xc26   :  { %v584_v41 = vmul.f32 %v1232_v38, %v488_v24  ;;  %v821_v24 = vadd.f32 %v820_v23, %v1515_v9 }
 0xc89   :  { %v587_v39 = vpop.permute.xlu1 %586 }
 0xc8a   :  { %v589_v40 = vmul.f32 %v1232_v38, %v587_v39 }
 0xc8c   :  { %591 = vrot.lane.b32.xlu0 %v589_v40, %s1398_s23 }
 0xcfe   :  { %v592_v42 = vpop.permute.xlu0 %591 }
 0xcff   :  { %v594_v43 = vadd.f32 %v592_v42, %v584_v41 }
 0xd01   :  { %1233 = vtanh.f32 %v594_v43 }
 0xd0b   :  { %v1234_v44 = vpop.eup %1233 }
 0xd0c   :  { %597 = vrot.lane.b32.xlu1 %v1234_v44, %s1397_s21 }
 0xd7e   :  { %v598_v45 = vpop.permute.xlu1 %597 }
 0xd7f   :  { %v600_v46 = vmul.f32 %v1232_v38, %v598_v45 }
 0xd81   :  { %602 = vrot.lane.b32.xlu0 %v600_v46, %s1398_s23 }
 0xdf3   :  { %v603_v47 = vpop.permute.xlu0 %602 }
 0xdf4   :  { %605 = vst.msk [vmem:[#allocation9 + $0x4] sm:$0x1] %vm180_vm2, %v603_v47  ;;  %1109 = vmatmul.mubr.msk.f32.vlgmr.msra.gmra.mrb[4].mxu1 %vm69_vm1, %v603_v47 }
 0xdf5   :  { %1177 = vmatpush3.bf16.msra.mxu1 %v1490_v5  ;;  %1130 = vmatprep.mubr.msk.f32.mxu1 %vm1395_vm0, %v1396_v1 }
 0xdf6   :  { %1178 = vmatprep.subr.bf16.mxu1 %v1394_v0 }
 0xdf9   :  { %1180 = vmatpush3.bf16.msra.mxu1 %v1493_v7 }
 0xec7   :  { %v678_v50 = vpop.f32.mrb[4].mxu1 }
 0xec8   :  { %v682_v51 = vadd.f32 %v678_v50, %v609_v49  ;;  %v1110_v52 = vpop.f32.mrb[5].mxu1 }
 0xeca   :  { %1235 = vtanh.f32 %v682_v51  ;;  %v998_v5 = vmul.f32 -1.442695, %v682_v51 }
 0xecc   :  { %1237 = vpow2.f32 %v998_v5 }
 0xed4   :  { %v1236_v53 = vpop.eup %1235 }
 0xed5   :  { %692 = vrot.lane.b32.xlu1 %v1236_v53, %s1397_s21 }
 0xed6   :  { %v1238_v54 = vpop.eup %1237 }
 0xed7   :  { %v686_v1 = vadd.f32 1.0, %v1238_v54 }
 0xed9   :  { %1239 = vrcp.f32 %v686_v1 }
 0xee3   :  { %v1240_v0 = vpop.eup %1239 }
 0xee4   :  { %v690_v56 = vmul.f32 %v1240_v0, %v594_v43 }
 0xf47   :  { %v693_v55 = vpop.permute.xlu1 %692 }
 0xf48   :  { %v695_v7 = vmul.f32 %v1240_v0, %v693_v55 }
 0xf4a   :  { %697 = vrot.lane.b32.xlu0 %v695_v7, %s1398_s23 }
 0xfbc   :  { %v698_v57 = vpop.permute.xlu0 %697 }
 0xfbd   :  { %v700_v58 = vadd.f32 %v698_v57, %v690_v56 }
 0xfbf   :  { %1241 = vtanh.f32 %v700_v58 }
 0xfc9   :  { %v1242_v59 = vpop.eup %1241 }
 0xfca   :  { %703 = vrot.lane.b32.xlu1 %v1242_v59, %s1397_s21 }
0x103c   :  { %v704_v60 = vpop.permute.xlu1 %703 }
0x103d   :  { %v706_v61 = vmul.f32 %v1240_v0, %v704_v60 }
0x103f   :  { %708 = vrot.lane.b32.xlu0 %v706_v61, %s1398_s23 }
0x10b1   :  { %v709_v62 = vpop.permute.xlu0 %708 }
0x10b2   :  { %711 = vst.msk [vmem:[#allocation9 + $0x5] sm:$0x1] %vm180_vm2, %v709_v62  ;;  %1120 = vmatmul.mubr.msk.f32.vlgmr.msra.gmra.mrb[6].mxu0 %vm69_vm1, %v709_v62 }
0x1185   :  { %v784_v3 = vpop.f32.mrb[6].mxu0 }
0x1186   :  { %v788_v4 = vadd.f32 %v784_v3, %v715_v2  ;;  %v1121_v6 = vpop.f32.mrb[7].mxu0 }
0x1188   :  { %1243 = vtanh.f32 %v788_v4  ;;  %v1001_v10 = vmul.f32 -1.442695, %v788_v4 }
0x118a   :  { %1245 = vpow2.f32 %v1001_v10 }
0x1192   :  { %v1244_v8 = vpop.eup %1243 }
0x1193   :  { %798 = vrot.lane.b32.xlu1 %v1244_v8, %s1397_s21 }
0x1194   :  { %v1246_v11 = vpop.eup %1245 }
0x1195   :  { %v792_v12 = vadd.f32 1.0, %v1246_v11 }
0x1197   :  { %1247 = vrcp.f32 %v792_v12 }
0x11a1   :  { %v1248_v13 = vpop.eup %1247 }
0x11a2   :  { %v796_v16 = vmul.f32 %v1248_v13, %v700_v58 }
0x1205   :  { %v799_v14 = vpop.permute.xlu1 %798 }
0x1206   :  { %v801_v15 = vmul.f32 %v1248_v13, %v799_v14 }
0x1208   :  { %803 = vrot.lane.b32.xlu0 %v801_v15, %s1398_s23 }
0x127a   :  { %v804_v17 = vpop.permute.xlu0 %803 }
0x127b   :  { %v806_v18 = vadd.f32 %v804_v17, %v796_v16 }
0x127d   :  { %1249 = vtanh.f32 %v806_v18 }
0x1287   :  { %v1250_v19 = vpop.eup %1249 }
0x1288   :  { %809 = vrot.lane.b32.xlu1 %v1250_v19, %s1397_s21 }
0x12fa   :  { %v810_v20 = vpop.permute.xlu1 %809 }
0x12fb   :  { %v812_v21 = vmul.f32 %v1248_v13, %v810_v20 }
0x12fd   :  { %814 = vrot.lane.b32.xlu0 %v812_v21, %s1398_s23 }
0x136f   :  { %v815_v22 = vpop.permute.xlu0 %814 }
0x1370   :  { %817 = vst.msk [vmem:[#allocation9 + $0x6] sm:$0x1] %vm180_vm2, %v815_v22  ;;  %1131 = vmatmul.mubr.msk.f32.vlgmr.msra.gmra.mrb[6].mxu1 %vm69_vm1, %v815_v22 }
0x1443   :  { %v890_v25 = vpop.f32.mrb[6].mxu1 }
0x1444   :  { %v894_v26 = vadd.f32 %v890_v25, %v821_v24  ;;  %v1132_v27 = vpop.f32.mrb[7].mxu1 }
0x1446   :  { %1251 = vtanh.f32 %v894_v26  ;;  %v1004_v29 = vmul.f32 -1.442695, %v894_v26 }
0x1448   :  { %1253 = vpow2.f32 %v1004_v29 }
0x1450   :  { %v1252_v28 = vpop.eup %1251 }
0x1451   :  { %904 = vrot.lane.b32.xlu1 %v1252_v28, %s1397_s21 }
0x1452   :  { %v1254_v30 = vpop.eup %1253 }
0x1453   :  { %v898_v31 = vadd.f32 1.0, %v1254_v30 }
0x1455   :  { %1255 = vrcp.f32 %v898_v31 }
0x145f   :  { %v1256_v32 = vpop.eup %1255 }
0x1460   :  { %v902_v35 = vmul.f32 %v1256_v32, %v806_v18 }
0x14c3   :  { %v905_v33 = vpop.permute.xlu1 %904 }
0x14c4   :  { %v907_v34 = vmul.f32 %v1256_v32, %v905_v33 }
0x14c6   :  { %909 = vrot.lane.b32.xlu0 %v907_v34, %s1398_s23 }
0x1538   :  { %v910_v36 = vpop.permute.xlu0 %909 }
0x1539   :  { %v912_v9 = vadd.f32 %v910_v36, %v902_v35 }
0x153b   :  { %1257 = vtanh.f32 %v912_v9 }
0x1545   :  { %v1258_v37 = vpop.eup %1257 }
0x1546   :  { %915 = vrot.lane.b32.xlu1 %v1258_v37, %s1397_s21 }
0x154a   :  { %926 = vrot.lane.b32.xlu1 %v912_v9, %s1399_s14 }
0x15b8   :  { %v916_v38 = vpop.permute.xlu1 %915 }
0x15b9   :  { %v918_v39 = vmul.f32 %v1256_v32, %v916_v38 }
0x15bb   :  { %920 = vrot.lane.b32.xlu0 %v918_v39, %s1398_s23 }
0x15bc   :  { %v927_v40 = vpop.permute.xlu1 %926 }
0x15bd   :  { %929 = vst.msk [vmem:[#allocation12] sm:$0x1] %vm180_vm2, %v927_v40 }
0x162d   :  { %v921_v41 = vpop.permute.xlu0 %920 }
0x162e   :  { %923 = vst.msk [vmem:[#allocation9 + $0x7] sm:$0x1] %vm180_vm2, %v921_v41  ;;  %924 = vst.msk [vmem:[#allocation10] sm:$0x1] %vm180_vm2, %v921_v41 }
0x162f   :  { %1324 = shalt.err (!%p1321_p9)
}
0x1630   :  { %s1325_s22 = scalar_lea.hbm %s1664_s7, 16 }
0x1631   :  { %p1326_p10 = scmp.ne.s32.totalorder %s1664_s7, %s1325_s22  ;;  %p1329_p11 = scmp.lt.u32.totalorder %s1325_s22, %s1664_s7 }
0x1633   :  { %p1331_p12 = pnand %p1329_p11, %p1326_p10 }
0x1635   :  { %1334 = shalt.err (!%p1331_p12)
}
0x1636   :  { %949 = dma.vmem_to_hbm [thread:$0]  %s947_s1, 16, %s1664_s7, [#allocation11]  }
0x1637   :  { %s1335_s26 = scalar_lea.vmem %s1604_s2, 128  ;;  %p1340_p0 = scmp.lt.s32.totalorder %s1604_s2, %s1604_s2 }
0x1638   :  { %p1336_p13 = scmp.ne.s32.totalorder %s1604_s2, %s1335_s26  ;;  %p1341_p1 = scmp.lt.s32.totalorder %s1335_s26, %s1335_s26 }
0x163a   :  { %p1342_p2 = por %p1341_p1, %p1340_p0 }
0x163c   :  { %p1343_p3 = pnand %p1342_p2, %p1336_p13 }
0x163e   :  { %1346 = shalt.err (!%p1343_p3)
}
0x163f   :  { %s1347_s29 = scalar_lea.hbm %s1663_s6, 128 }
0x1640   :  { %p1348_p4 = scmp.ne.s32.totalorder %s1663_s6, %s1347_s29  ;;  %p1351_p5 = scmp.lt.u32.totalorder %s1347_s29, %s1663_s6 }
0x1642   :  { %p1353_p6 = pnand %p1351_p5, %p1348_p4 }
0x1644   :  { %1356 = shalt.err (!%p1353_p6)
}
0x1645   :  { %939 = dma.vmem_to_hbm [thread:$0]  %s1604_s2, 128, %s1663_s6, [#allocation6]  }
0x1646   :  { %s1357_s13 = scalar_lea.vmem %s1608_s4, 16  ;;  %s1361_s14 = scalar_lea.vmem %s1608_s4, 32 }
0x1647   :  { %p1358_p7 = scmp.ne.s32.totalorder %s1608_s4, %s1357_s13  ;;  %p1362_p8 = scmp.lt.s32.totalorder %s1608_s4, %s1608_s4 }
0x1648   :  { %p1363_p9 = scmp.lt.s32.totalorder %s1361_s14, %s1357_s13 }
0x164a   :  { %p1364_p10 = por %p1363_p9, %p1362_p8 }
0x164c   :  { %p1365_p11 = pnand %p1364_p10, %p1358_p7 }
0x164e   :  { %1368 = shalt.err (!%p1365_p11)
}
0x164f   :  { %s1369_s16 = scalar_lea.hbm %s1665_s8, 16 }
0x1650   :  { %p1370_p12 = scmp.ne.s32.totalorder %s1665_s8, %s1369_s16  ;;  %p1373_p13 = scmp.lt.u32.totalorder %s1369_s16, %s1665_s8 }
0x1652   :  { %p1375_p0 = pnand %p1373_p13, %p1370_p12 }
0x1654   :  { %1378 = shalt.err (!%p1375_p0)
}
0x1655   :  { %959 = dma.vmem_to_hbm [thread:$0]  %s1608_s4, 16, %s1665_s8, [#allocation11]  }
0x1656   :  { %1385 = dma.done.wait [#allocation6], 128  }
0x1657   :  { %1386 = vsyncadd [#allocation6], 4294967168 }
0x1658   :  { %1387 = dma.done.wait [#allocation11], 32  }
0x1659   :  { %1388 = vsyncadd [#allocation11], 4294967264 }
0x165a   :  { %969 = vsyncpa [#allocation5], 1 }
0x165b   :  { %970 = vsyncpa [#allocation8], 1 }
0x165c   :  { %971 = vsyncpa [#allocation6], 1 }
0x165d   :  { %972 = vsyncpa [#allocation11], 1 }

</bundles_post_ra>
